<compile_context>
chip_gen: v7x
topology: tpu7x:2x2x1
jax: 0.10.0
libtpu: 0.0.40
codegen_flags: <defaults>
</compile_context>

<pallas_src>
import jax
import jax.numpy as jnp
from jax.experimental import pallas as pl
from jax.experimental.pallas import tpu as pltpu


def _proj_mlp_kernel(x_ref, w1_ref, t1_ref, w2_ref, t2_ref, o_ref):
    # Layer 1: Linear (BN scale pre-folded into W1) + shift + ReLU.
    # MXU inputs in bf16, f32 accumulation; elementwise chain stays f32
    # (v5e VPU has no bf16 ALU).
    h = jnp.dot(x_ref[...].astype(jnp.bfloat16), w1_ref[...],
                preferred_element_type=jnp.float32)
    h = jnp.maximum(h + t1_ref[...], 0.0)
    # Layer 3: Linear (BN scale pre-folded into W2) + shift, no ReLU.
    z = jnp.dot(h.astype(jnp.bfloat16), w2_ref[...],
                preferred_element_type=jnp.float32)
    o_ref[...] = (z + t2_ref[...]).astype(o_ref.dtype)


def simclr_forward(h, params, *, tm=512, eps=1e-5, out_dtype=jnp.float32):
    """h: [N, in_features] activations (f32 or bf16). Returns [N, cluster_hidden_dim]."""
    n, in_f = h.shape
    hid = params["w1"].shape[1]
    out = params["w2"].shape[1]

    # Fold (Linear bias + eval-mode BatchNorm) into per-feature scale/shift,
    # then fold the scale into the weights (f32 math, then cast to bf16).
    s1 = params["gamma1"] / jnp.sqrt(params["var1"] + eps)
    t1 = params["beta1"] + (params["b1"] - params["mean1"]) * s1
    s2 = params["gamma2"] / jnp.sqrt(params["var2"] + eps)
    t2 = params["beta2"] + (params["b2"] - params["mean2"]) * s2

    w1 = (params["w1"].astype(jnp.float32) * s1[None, :]).astype(jnp.bfloat16)
    w2 = (params["w2"].astype(jnp.float32) * s2[None, :]).astype(jnp.bfloat16)
    t1 = t1.reshape(1, hid).astype(jnp.float32)   # shift stays f32
    t2 = t2.reshape(1, out).astype(jnp.float32)

    # Row tiling: big tiles for the HBM-bound regime, clamp for tiny batches,
    # pad to a tile multiple for arbitrary n (padded rows compute garbage that
    # is sliced off; they never touch real data).
    tm = min(tm, n)
    n_pad = pl.cdiv(n, tm) * tm
    x = h if n_pad == n else jnp.pad(h, ((0, n_pad - n), (0, 0)))
    grid = (n_pad // tm,)

    x_bytes = 2 if x.dtype == jnp.bfloat16 else 4
    flops = 2 * n_pad * (in_f * hid + hid * out)
    bytes_accessed = (
        n_pad * in_f * x_bytes                       # activations in
        + w1.size * 2 + w2.size * 2                  # bf16 folded weights
        + (t1.size + t2.size) * 4                    # f32 shifts
        + n_pad * out * jnp.dtype(out_dtype).itemsize  # output
    )

    z = pl.pallas_call(
        _proj_mlp_kernel,
        out_shape=jax.ShapeDtypeStruct((n_pad, out), out_dtype),
        grid_spec=pltpu.PrefetchScalarGridSpec(
            num_scalar_prefetch=0,
            grid=grid,
            in_specs=[
                pl.BlockSpec((tm, in_f), lambda i: (i, 0)),    # activations: row-tiled
                pl.BlockSpec((in_f, hid), lambda i: (0, 0)),   # weights / shifts: resident
                pl.BlockSpec((1, hid), lambda i: (0, 0)),
                pl.BlockSpec((hid, out), lambda i: (0, 0)),
                pl.BlockSpec((1, out), lambda i: (0, 0)),
            ],
            out_specs=pl.BlockSpec((tm, out), lambda i: (i, 0)),
        ),
        compiler_params=pltpu.CompilerParams(
            # Rows are independent -> shard the grid across both TCs on v7x.
            dimension_semantics=(pltpu.PARALLEL,),
        ),
        cost_estimate=pl.CostEstimate(
            flops=flops, transcendentals=0, bytes_accessed=bytes_accessed),
    )(x, w1, t1, w2, t2)

    return z if n_pad == n else z[:n]


def _ref_forward(x, p, eps=1e-5):
    """Pure-JAX reference mirroring the kernel's folded-weight bf16/f32 math."""
    s1 = p["gamma1"] / jnp.sqrt(p["var1"] + eps)
    t1 = p["beta1"] + (p["b1"] - p["mean1"]) * s1
    s2 = p["gamma2"] / jnp.sqrt(p["var2"] + eps)
    t2 = p["beta2"] + (p["b2"] - p["mean2"]) * s2
    w1 = (p["w1"] * s1[None, :]).astype(jnp.bfloat16)
    w2 = (p["w2"] * s2[None, :]).astype(jnp.bfloat16)
    h1 = jnp.dot(x.astype(jnp.bfloat16), w1, preferred_element_type=jnp.float32)
    h1 = jnp.maximum(h1 + t1, 0.0)
    z = jnp.dot(h1.astype(jnp.bfloat16), w2, preferred_element_type=jnp.float32)
    return z + t2


def _init_linear(key, in_features, out_features):
    """Mimics nn.Linear init (uniform in +/- 1/sqrt(in)); W stored as [in, out]."""
    kw, kb = jax.random.split(key)
    bound = 1.0 / (in_features ** 0.5)
    w = jax.random.uniform(kw, (in_features, out_features), jnp.float32, -bound, bound)
    b = jax.random.uniform(kb, (out_features,), jnp.float32, -bound, bound)
    return w, b


def _init_bn(key, dim):
    """Eval-mode BatchNorm1d state (affine + running stats); perturbed for a real test."""
    kg, kb, km, kv = jax.random.split(key, 4)
    gamma = 1.0 + 0.1 * jax.random.normal(kg, (dim,), jnp.float32)
    beta = 0.1 * jax.random.normal(kb, (dim,), jnp.float32)
    mean = 0.1 * jax.random.normal(km, (dim,), jnp.float32)
    var = 1.0 + 0.05 * jax.random.uniform(kv, (dim,), jnp.float32)
    return gamma, beta, mean, var


if __name__ == "__main__":
    # Small shapes consistent with SimCLRModule:
    #   in_features = args.hidden_dim = 32
    #   projection_dim = 128, cluster_hidden_dim = 128 (lane-dense feature dims)
    N = 128          # batch of embeddings
    IN_F = 32        # args.hidden_dim
    PROJ = 128       # args.projection_dim
    OUT = 128        # args.cluster_hidden_dim

    key = jax.random.PRNGKey(0)
    kx, kl1, kl2, kb1, kb2 = jax.random.split(key, 5)

    h = jax.random.normal(kx, (N, IN_F), jnp.float32)

    w1, b1 = _init_linear(kl1, IN_F, PROJ)
    w2, b2 = _init_linear(kl2, PROJ, OUT)
    g1, be1, m1, v1 = _init_bn(kb1, PROJ)
    g2, be2, m2, v2 = _init_bn(kb2, OUT)

    params = dict(w1=w1, b1=b1, gamma1=g1, beta1=be1, mean1=m1, var1=v1,
                  w2=w2, b2=b2, gamma2=g2, beta2=be2, mean2=m2, var2=v2)

    # tm clamps to N here (grid=(1,)) — don't shard a us-scale call across TCs.
    z = simclr_forward(h, params)
    z = jax.block_until_ready(z)

    ref = _ref_forward(h, params)
    assert z.shape == (N, OUT)
    assert jnp.allclose(z, ref, atol=2e-3, rtol=2e-3)

    print("KERNEL_OK")
</pallas_src>

<mosaic_0001>
module attributes {stable_mosaic.version = 11 : i64} {
  func.func @_proj_mlp_kernel(%arg0: i32, %arg1: memref<128x32xf32, #tpu.memory_space<vmem>>, %arg2: memref<32x128xbf16, #tpu.memory_space<vmem>>, %arg3: memref<1x128xf32, #tpu.memory_space<vmem>>, %arg4: memref<128x128xbf16, #tpu.memory_space<vmem>>, %arg5: memref<1x128xf32, #tpu.memory_space<vmem>>, %arg6: memref<128x128xf32, #tpu.memory_space<vmem>>) attributes {dimension_semantics = [#tpu.dimension_semantics<parallel>], iteration_bounds = array<i64: 1>, scalar_prefetch = 0 : i64, scratch_operands = 0 : i64, tpu.core_type = #tpu.core_type<tc>, window_params = [{transform_indices = @transform_0, window_bounds = array<i64: 128, 32>}, {pipeline_mode = #tpu.pipeline_mode<synchronous>, transform_indices = @transform_1, window_bounds = array<i64: 32, 128>}, {pipeline_mode = #tpu.pipeline_mode<synchronous>, transform_indices = @transform_2, window_bounds = array<i64: 1, 128>}, {pipeline_mode = #tpu.pipeline_mode<synchronous>, transform_indices = @transform_3, window_bounds = array<i64: 128, 128>}, {pipeline_mode = #tpu.pipeline_mode<synchronous>, transform_indices = @transform_4, window_bounds = array<i64: 1, 128>}, {transform_indices = @transform_5, window_bounds = array<i64: 128, 128>}]} {
    %c0 = arith.constant 0 : index
    %c0_0 = arith.constant 0 : index
    %0 = vector.load %arg1[%c0, %c0_0] : memref<128x32xf32, #tpu.memory_space<vmem>>, vector<128x32xf32>
    %1 = arith.truncf %0 : vector<128x32xf32> to vector<128x32xbf16>
    %c0_1 = arith.constant 0 : index
    %c0_2 = arith.constant 0 : index
    %2 = vector.load %arg2[%c0_1, %c0_2] : memref<32x128xbf16, #tpu.memory_space<vmem>>, vector<32x128xbf16>
    %cst = arith.constant dense<0.000000e+00> : vector<128x128xf32>
    %3 = tpu.matmul %1, %2, %cst {dimension_numbers = #tpu.dot_dimension_numbers<[1], [0], [0], [1], [0, 0, 1, 1], [], []>} : vector<128x32xbf16>, vector<32x128xbf16>, vector<128x128xf32> -> vector<128x128xf32>
    %c0_3 = arith.constant 0 : index
    %c0_4 = arith.constant 0 : index
    %4 = vector.load %arg3[%c0_3, %c0_4] : memref<1x128xf32, #tpu.memory_space<vmem>>, vector<1x128xf32>
    %5 = vector.broadcast %4 : vector<1x128xf32> to vector<128x128xf32>
    %6 = arith.addf %3, %5 : vector<128x128xf32>
    %cst_5 = arith.constant 0.000000e+00 : f32
    %7 = vector.broadcast %cst_5 : f32 to vector<128x128xf32>
    %8 = arith.maximumf %6, %7 : vector<128x128xf32>
    %9 = arith.truncf %8 : vector<128x128xf32> to vector<128x128xbf16>
    %c0_6 = arith.constant 0 : index
    %c0_7 = arith.constant 0 : index
    %10 = vector.load %arg4[%c0_6, %c0_7] : memref<128x128xbf16, #tpu.memory_space<vmem>>, vector<128x128xbf16>
    %cst_8 = arith.constant dense<0.000000e+00> : vector<128x128xf32>
    %11 = tpu.matmul %9, %10, %cst_8 {dimension_numbers = #tpu.dot_dimension_numbers<[1], [0], [0], [1], [0, 0, 1, 1], [], []>} : vector<128x128xbf16>, vector<128x128xbf16>, vector<128x128xf32> -> vector<128x128xf32>
    %c0_9 = arith.constant 0 : index
    %c0_10 = arith.constant 0 : index
    %12 = vector.load %arg5[%c0_9, %c0_10] : memref<1x128xf32, #tpu.memory_space<vmem>>, vector<1x128xf32>
    %13 = vector.broadcast %12 : vector<1x128xf32> to vector<128x128xf32>
    %14 = arith.addf %11, %13 : vector<128x128xf32>
    %c0_11 = arith.constant 0 : index
    %c0_12 = arith.constant 0 : index
    %15 = vector.load %arg6[%c0_11, %c0_12] : memref<128x128xf32, #tpu.memory_space<vmem>>, vector<128x128xf32>
    tpu.vector_store %arg6[%c0_11, %c0_12], %14 {strides = array<i32>} : memref<128x128xf32, #tpu.memory_space<vmem>>, vector<128x128xf32>,
    return
  }
  func.func @transform_0(%arg0: i32) -> (i32, i32) {
    %c0_i32 = arith.constant 0 : i32
    %c0_i32_0 = arith.constant 0 : i32
    return %arg0, %c0_i32 : i32, i32
  }
  func.func @transform_1(%arg0: i32) -> (i32, i32) {
    %c0_i32 = arith.constant 0 : i32
    %c0_i32_0 = arith.constant 0 : i32
    %c0_i32_1 = arith.constant 0 : i32
    return %c0_i32, %c0_i32_0 : i32, i32
  }
  func.func @transform_2(%arg0: i32) -> (i32, i32) {
    %c0_i32 = arith.constant 0 : i32
    %c0_i32_0 = arith.constant 0 : i32
    %c0_i32_1 = arith.constant 0 : i32
    return %c0_i32, %c0_i32_0 : i32, i32
  }
  func.func @transform_3(%arg0: i32) -> (i32, i32) {
    %c0_i32 = arith.constant 0 : i32
    %c0_i32_0 = arith.constant 0 : i32
    %c0_i32_1 = arith.constant 0 : i32
    return %c0_i32, %c0_i32_0 : i32, i32
  }
  func.func @transform_4(%arg0: i32) -> (i32, i32) {
    %c0_i32 = arith.constant 0 : i32
    %c0_i32_0 = arith.constant 0 : i32
    %c0_i32_1 = arith.constant 0 : i32
    return %c0_i32, %c0_i32_0 : i32, i32
  }
  func.func @transform_5(%arg0: i32) -> (i32, i32) {
    %c0_i32 = arith.constant 0 : i32
    %c0_i32_0 = arith.constant 0 : i32
    return %arg0, %c0_i32 : i32, i32
  }
}

</mosaic_0001>

<bundles_post_ra>
// kernel: tpu_custom_call.1
= control target key start
LH: loop header
LB: loop body
LE: loop exit
PB: predicated region body
PF: predicated region fallthrough
CT: control target
= control target key end

     0   :  { %vm69_vm0 = vcmask 261120   ;;  %s703_s0 = inlined_call_operand.vmem [shape: f32[128,32], index: 0, kind: input, shape index: {}]   ;;  %s704_s1 = inlined_call_operand.vmem [shape: bf16[32,128], index: 1, kind: input, shape index: {}]   ;;  %s705_s2 = inlined_call_operand.vmem [shape: f32[1,128], index: 2, kind: input, shape index: {}]   ;;  %s706_s3 = inlined_call_operand.vmem [shape: bf16[128,128], index: 3, kind: input, shape index: {}]   ;;  %s707_s4 = inlined_call_operand.vmem [shape: f32[1,128], index: 4, kind: input, shape index: {}]   ;;  %s708_s5 = inlined_call_operand.hbm [shape: f32[128,128], index: 5, kind: output, shape index: {}]  }
   0x1   :  { %v532_v0 = vld [vmem:[%s704_s1] sm:$0xff]   ;;  %v533_v1 = vld [vmem:[%s704_s1 + $0x8] sm:$0xff]   ;;  %v24_v5 = vld [vmem:[%s703_s0 + $0x10] sm:$0xff] }
   0x2   :  { %461 = vmatprep.subr.bf16.mxu0 %v532_v0  ;;  %v22_v2 = vld [vmem:[%s703_s0] sm:$0xff]  ;;  %v23_v3 = vld [vmem:[%s703_s0 + $0x8] sm:$0xff]  ;;  %v25_v6 = vld [vmem:[%s703_s0 + $0x18] sm:$0xff] }
   0x3   :  { %462 = vmatpush3.bf16.msra.mxu0 %v532_v0  ;;  %v38_v4 = vpack.c.bf16 %v23_v3, %v22_v2  ;;  %v26_v7 = vld [vmem:[%s703_s0 + $0x20] sm:$0xff]  ;;  %v27_v8 = vld [vmem:[%s703_s0 + $0x28] sm:$0xff]  ;;  %v39_v9 = vpack.c.bf16 %v25_v6, %v24_v5  ;;  %v28_v12 = vld [vmem:[%s703_s0 + $0x30] sm:$0xff] }
   0x4   :  { %463 = vmatprep.subr.bf16.mxu0 %v533_v1  ;;  %v40_v10 = vpack.c.bf16 %v27_v8, %v26_v7  ;;  %v534_v11 = vld [vmem:[%s706_s3] sm:$0xff]   ;;  %v29_v13 = vld [vmem:[%s703_s0 + $0x38] sm:$0xff]  ;;  %v535_v14 = vld [vmem:[%s706_s3 + $0x8] sm:$0xff]  }
   0x5   :  { %465 = vmatprep.mubr.msk.bf16.mxu0 %vm69_vm0, %v38_v4  ;;  %v30_v15 = vld [vmem:[%s703_s0 + $0x40] sm:$0xff]  ;;  %v31_v16 = vld [vmem:[%s703_s0 + $0x48] sm:$0xff]  ;;  %513 = vmatprep.subr.bf16.mxu1 %v534_v11  ;;  %v536_v17 = vld [vmem:[%s706_s3 + $0x10] sm:$0xff]   ;;  %v41_v18 = vpack.c.bf16 %v29_v13, %v28_v12 }
   0x6   :  { %521 = vmatpush3.bf16.msra.mxu1 %v534_v11 }
   0x7   :  { %464 = vmatpush3.bf16.msra.mxu0 %v533_v1  ;;  %514 = vmatprep.subr.bf16.mxu1 %v535_v14 }
   0x8   :  { %481 = vmatprep.subr.bf16.mxu0 %v534_v11 }
   0xa   :  { %466 = vmatmul.mubr.msk.bf16.vlgmr.msra.gmra.mrb[0].mxu0 %vm69_vm0, %v39_v9 }
   0xb   :  { %469 = vmatprep.mubr.msk.bf16.mxu0 %vm69_vm0, %v40_v10  ;;  %482 = vmatpush3.bf16.msra.mxu0 %v534_v11 }
   0xc   :  { %483 = vmatprep.subr.bf16.mxu0 %v535_v14 }
   0xd   :  { %10 = vsyncpa [#allocation3], 0  ;;  %v42_v19 = vpack.c.bf16 %v31_v16, %v30_v15  ;;  %v537_v20 = vld [vmem:[%s706_s3 + $0x18] sm:$0xff]   ;;  %522 = vmatpush3.bf16.msra.mxu1 %v535_v14  ;;  %v32_v21 = vld [vmem:[%s703_s0 + $0x50] sm:$0xff] }
   0xe   :  { %515 = vmatprep.subr.bf16.mxu1 %v536_v17  ;;  %v33_v22 = vld [vmem:[%s703_s0 + $0x58] sm:$0xff]  ;;  %v34_v23 = vld [vmem:[%s703_s0 + $0x60] sm:$0xff]  ;;  %v35_v24 = vld [vmem:[%s703_s0 + $0x68] sm:$0xff] }
   0xf   :  { %484 = vmatpush3.bf16.msra.mxu0 %v535_v14  ;;  %v538_v25 = vld [vmem:[%s706_s3 + $0x20] sm:$0xff]   ;;  %v43_v26 = vpack.c.bf16 %v33_v22, %v32_v21  ;;  %v44_v27 = vpack.c.bf16 %v35_v24, %v34_v23  ;;  %v539_v28 = vld [vmem:[%s706_s3 + $0x28] sm:$0xff]   ;;  %v36_v29 = vld [vmem:[%s703_s0 + $0x70] sm:$0xff] }
  0x10   :  { %485 = vmatprep.subr.bf16.mxu0 %v536_v17  ;;  %v37_v30 = vld [vmem:[%s703_s0 + $0x78] sm:$0xff]  ;;  %v540_v32 = vld [vmem:[%s706_s3 + $0x30] sm:$0xff]   ;;  %v415_v34 = vld [vmem:[%s705_s2] ss:$0 sm:$0xff] }
  0x11   :  { %523 = vmatpush3.bf16.msra.mxu1 %v536_v17  ;;  %v45_v31 = vpack.c.bf16 %v37_v30, %v36_v29  ;;  %v541_v33 = vld [vmem:[%s706_s3 + $0x38] sm:$0xff]  }
  0x12   :  { %470 = vmatmul.mubr.msk.bf16.gmra.mrb[4].mxu0 %vm69_vm0, %v41_v18  ;;  %516 = vmatprep.subr.bf16.mxu1 %v537_v20 }
  0x13   :  { %473 = vmatprep.mubr.msk.bf16.mxu0 %vm69_vm0, %v42_v19  ;;  %486 = vmatpush3.bf16.msra.mxu0 %v536_v17 }
  0x14   :  { %487 = vmatprep.subr.bf16.mxu0 %v537_v20 }
  0x15   :  { %524 = vmatpush3.bf16.msra.mxu1 %v537_v20 }
  0x16   :  { %517 = vmatprep.subr.bf16.mxu1 %v538_v25 }
  0x17   :  { %488 = vmatpush3.bf16.msra.mxu0 %v537_v20 }
  0x18   :  { %489 = vmatprep.subr.bf16.mxu0 %v538_v25 }
  0x19   :  { %525 = vmatpush3.bf16.msra.mxu1 %v538_v25 }
  0x1a   :  { %474 = vmatmul.mubr.msk.bf16.gmra.mrb[8].mxu0 %vm69_vm0, %v43_v26  ;;  %518 = vmatprep.subr.bf16.mxu1 %v539_v28 }
  0x1b   :  { %477 = vmatprep.mubr.msk.bf16.mxu0 %vm69_vm0, %v44_v27  ;;  %490 = vmatpush3.bf16.msra.mxu0 %v538_v25  ;;  %v426_v27 = vld [vmem:[%s707_s4] ss:$0 sm:$0xff]  ;;  %s566_s4 = smov [#allocation2]  }
  0x1c   :  { %491 = vmatprep.subr.bf16.mxu0 %v539_v28  ;;  %s404_s19 = sshll.u32 %s566_s4, 4  ;;  %s405_s19 = int_to_ptr.vmem [resolvable:$true] %s404_s19 }
  0x1d   :  { %526 = vmatpush3.bf16.msra.mxu1 %v539_v28  ;;  %s542_s20 = scalar_lea.vmem %s405_s19, 2048  ;;  %p547_p1 = scmp.lt.s32.totalorder %s405_s19, %s405_s19 }
  0x1e   :  { %519 = vmatprep.subr.bf16.mxu1 %v540_v32  ;;  %p543_p0 = scmp.ne.s32.totalorder %s405_s19, %s542_s20  ;;  %p548_p2 = scmp.lt.s32.totalorder %s542_s20, %s542_s20 }
  0x1f   :  { %492 = vmatpush3.bf16.msra.mxu0 %v539_v28 }
  0x20   :  { %493 = vmatprep.subr.bf16.mxu0 %v540_v32  ;;  %p549_p3 = por %p548_p2, %p547_p1 }
  0x21   :  { %527 = vmatpush3.bf16.msra.mxu1 %v540_v32 }
  0x22   :  { %478 = vmatmul.mubr.msk.bf16.gmra.mrb[12].mxu0 %vm69_vm0, %v45_v31  ;;  %520 = vmatprep.subr.bf16.mxu1 %v541_v33  ;;  %p550_p4 = pnand %p549_p3, %p543_p0 }
  0x23   :  { %494 = vmatpush3.bf16.msra.mxu0 %v540_v32 }
  0x24   :  { %495 = vmatprep.subr.bf16.mxu0 %v541_v33 }
  0x25   :  { %528 = vmatpush3.bf16.msra.mxu1 %v541_v33 }
  0x27   :  { %496 = vmatpush3.bf16.msra.mxu0 %v541_v33 }
  0xdd   :  { %v467_v35 = vpop.f32.mrb[0].mxu0 }
  0xde   :  { %v137_v36 = vadd.f32 %v467_v35, %v415_v34  ;;  %v128_v37 = vpop.f32.mrb[1].mxu0 }
  0xdf   :  { %v129_v38 = vadd.f32 %v415_v34, %v128_v37  ;;  %v468_v39 = vpop.f32.mrb[2].mxu0 }
  0xe0   :  { %v140_v40 = vadd.f32 %v468_v39, %v415_v34  ;;  %v131_v41 = vpop.f32.mrb[3].mxu0  ;;  %v193_v43 = vmax.f32 %v137_v36, 0.0 }
  0xe1   :  { %v132_v42 = vadd.f32 %v415_v34, %v131_v41  ;;  %v191_v45 = vmax.f32 %v129_v38, 0.0 }
  0xe2   :  { %v194_v44 = vmax.f32 %v140_v40, 0.0 }
  0xe3   :  { %v192_v46 = vmax.f32 %v132_v42, 0.0 }
  0xe4   :  { %v208_v47 = vpack.c.bf16 %v194_v44, %v193_v43 }
  0xe5   :  { %v207_v48 = vpack.c.bf16 %v192_v46, %v191_v45  ;;  %v471_v49 = vpop.f32.mrb[4].mxu0 }
  0xe6   :  { %v153_v50 = vadd.f32 %v471_v49, %v415_v34  ;;  %v144_v51 = vpop.f32.mrb[5].mxu0 }
  0xe7   :  { %v145_v52 = vadd.f32 %v415_v34, %v144_v51  ;;  %v472_v53 = vpop.f32.mrb[6].mxu0  ;;  %497 = vmatprep.mubr.bf16.mxu0 %v207_v48 }
  0xe8   :  { %v156_v54 = vadd.f32 %v472_v53, %v415_v34  ;;  %v147_v55 = vpop.f32.mrb[7].mxu0  ;;  %498 = vmatmul.mubr.bf16.vlgmr.msra.gmra.mrb[16].mxu0 %v208_v47  ;;  %v197_v57 = vmax.f32 %v153_v50, 0.0 }
  0xe9   :  { %v148_v56 = vadd.f32 %v415_v34, %v147_v55  ;;  %v195_v59 = vmax.f32 %v145_v52, 0.0 }
  0xea   :  { %v198_v58 = vmax.f32 %v156_v54, 0.0 }
  0xeb   :  { %v196_v60 = vmax.f32 %v148_v56, 0.0 }
  0xec   :  { %v210_v61 = vpack.c.bf16 %v198_v58, %v197_v57 }
  0xed   :  { %v475_v62 = vpop.f32.mrb[8].mxu0  ;;  %v209_v63 = vpack.c.bf16 %v196_v60, %v195_v59 }
  0xee   :  { %v169_v0 = vadd.f32 %v475_v62, %v415_v34  ;;  %v160_v1 = vpop.f32.mrb[9].mxu0 }
  0xef   :  { %v161_v2 = vadd.f32 %v415_v34, %v160_v1  ;;  %v476_v3 = vpop.f32.mrb[10].mxu0  ;;  %501 = vmatprep.mubr.bf16.mxu1 %v209_v63 }
  0xf0   :  { %v172_v4 = vadd.f32 %v476_v3, %v415_v34  ;;  %v163_v5 = vpop.f32.mrb[11].mxu0  ;;  %502 = vmatmul.mubr.bf16.vlgmr.msra.gmra.mrb[0].mxu1 %v210_v61  ;;  %v201_v7 = vmax.f32 %v169_v0, 0.0 }
  0xf1   :  { %v164_v6 = vadd.f32 %v415_v34, %v163_v5  ;;  %v199_v9 = vmax.f32 %v161_v2, 0.0 }
  0xf2   :  { %v202_v8 = vmax.f32 %v172_v4, 0.0 }
  0xf3   :  { %v200_v10 = vmax.f32 %v164_v6, 0.0 }
  0xf4   :  { %v212_v11 = vpack.c.bf16 %v202_v8, %v201_v7 }
  0xf5   :  { %v211_v12 = vpack.c.bf16 %v200_v10, %v199_v9  ;;  %v479_v13 = vpop.f32.mrb[12].mxu0 }
  0xf6   :  { %v185_v14 = vadd.f32 %v479_v13, %v415_v34  ;;  %v176_v15 = vpop.f32.mrb[13].mxu0 }
  0xf7   :  { %v177_v16 = vadd.f32 %v415_v34, %v176_v15  ;;  %v480_v17 = vpop.f32.mrb[14].mxu0  ;;  %505 = vmatprep.mubr.bf16.mxu1 %v211_v12 }
  0xf8   :  { %v188_v18 = vadd.f32 %v480_v17, %v415_v34  ;;  %v179_v19 = vpop.f32.mrb[15].mxu0  ;;  %506 = vmatmul.mubr.bf16.gmra.mrb[4].mxu1 %v212_v11  ;;  %v205_v21 = vmax.f32 %v185_v14, 0.0 }
  0xf9   :  { %v180_v20 = vadd.f32 %v415_v34, %v179_v19  ;;  %v203_v23 = vmax.f32 %v177_v16, 0.0 }
  0xfa   :  { %v206_v22 = vmax.f32 %v188_v18, 0.0 }
  0xfb   :  { %v204_v24 = vmax.f32 %v180_v20, 0.0 }
  0xfc   :  { %v214_v25 = vpack.c.bf16 %v206_v22, %v205_v21 }
  0xfd   :  { %v213_v26 = vpack.c.bf16 %v204_v24, %v203_v23 }
  0xff   :  { %509 = vmatprep.mubr.bf16.mxu1 %v213_v26 }
 0x100   :  { %510 = vmatmul.mubr.bf16.gmra.mrb[8].mxu1 %v214_v25 }
 0x1bb   :  { %v499_v28 = vpop.f32.mrb[16].mxu0 }
 0x1bc   :  { %v329_v29 = vadd.f32 %v499_v28, %v426_v27  ;;  %v320_v30 = vpop.f32.mrb[17].mxu0 }
 0x1bd   :  { %v321_v31 = vadd.f32 %v426_v27, %v320_v30  ;;  %v500_v32 = vpop.f32.mrb[18].mxu0 }
 0x1be   :  { %385 = vst [vmem:[#allocation2 + $0x10] sm:$0xff] %v329_v29  ;;  %v332_v33 = vadd.f32 %v500_v32, %v426_v27  ;;  %v323_v34 = vpop.f32.mrb[19].mxu0 }
 0x1bf   :  { %383 = vst [vmem:[#allocation2] sm:$0xff] %v321_v31  ;;  %v324_v35 = vadd.f32 %v426_v27, %v323_v34 }
 0x1c0   :  { %386 = vst [vmem:[#allocation2 + $0x18] sm:$0xff] %v332_v33 }
 0x1c1   :  { %384 = vst [vmem:[#allocation2 + $0x8] sm:$0xff] %v324_v35 }
 0x1c3   :  { %v503_v36 = vpop.f32.mrb[0].mxu1 }
 0x1c4   :  { %v345_v37 = vadd.f32 %v503_v36, %v426_v27  ;;  %v336_v38 = vpop.f32.mrb[1].mxu1 }
 0x1c5   :  { %v337_v39 = vadd.f32 %v426_v27, %v336_v38  ;;  %v504_v40 = vpop.f32.mrb[2].mxu1 }
 0x1c6   :  { %389 = vst [vmem:[#allocation2 + $0x30] sm:$0xff] %v345_v37  ;;  %v348_v41 = vadd.f32 %v504_v40, %v426_v27  ;;  %v339_v42 = vpop.f32.mrb[3].mxu1 }
 0x1c7   :  { %387 = vst [vmem:[#allocation2 + $0x20] sm:$0xff] %v337_v39  ;;  %v340_v43 = vadd.f32 %v426_v27, %v339_v42 }
 0x1c8   :  { %390 = vst [vmem:[#allocation2 + $0x38] sm:$0xff] %v348_v41 }
 0x1c9   :  { %388 = vst [vmem:[#allocation2 + $0x28] sm:$0xff] %v340_v43 }
 0x1cb   :  { %v507_v44 = vpop.f32.mrb[4].mxu1 }
 0x1cc   :  { %v361_v45 = vadd.f32 %v507_v44, %v426_v27  ;;  %v352_v46 = vpop.f32.mrb[5].mxu1 }
 0x1cd   :  { %v353_v47 = vadd.f32 %v426_v27, %v352_v46  ;;  %v508_v48 = vpop.f32.mrb[6].mxu1 }
 0x1ce   :  { %393 = vst [vmem:[#allocation2 + $0x50] sm:$0xff] %v361_v45  ;;  %v364_v49 = vadd.f32 %v508_v48, %v426_v27  ;;  %v355_v50 = vpop.f32.mrb[7].mxu1 }
 0x1cf   :  { %391 = vst [vmem:[#allocation2 + $0x40] sm:$0xff] %v353_v47  ;;  %v356_v51 = vadd.f32 %v426_v27, %v355_v50 }
 0x1d0   :  { %394 = vst [vmem:[#allocation2 + $0x58] sm:$0xff] %v364_v49 }
 0x1d1   :  { %392 = vst [vmem:[#allocation2 + $0x48] sm:$0xff] %v356_v51 }
 0x1d3   :  { %v511_v52 = vpop.f32.mrb[8].mxu1 }
 0x1d4   :  { %v377_v53 = vadd.f32 %v511_v52, %v426_v27  ;;  %v368_v54 = vpop.f32.mrb[9].mxu1 }
 0x1d5   :  { %v369_v55 = vadd.f32 %v426_v27, %v368_v54  ;;  %v512_v56 = vpop.f32.mrb[10].mxu1 }
 0x1d6   :  { %397 = vst [vmem:[#allocation2 + $0x70] sm:$0xff] %v377_v53  ;;  %v380_v57 = vadd.f32 %v512_v56, %v426_v27  ;;  %v371_v58 = vpop.f32.mrb[11].mxu1 }
 0x1d7   :  { %395 = vst [vmem:[#allocation2 + $0x60] sm:$0xff] %v369_v55  ;;  %v372_v59 = vadd.f32 %v426_v27, %v371_v58 }
 0x1d8   :  { %398 = vst [vmem:[#allocation2 + $0x78] sm:$0xff] %v380_v57 }
 0x1d9   :  { %396 = vst [vmem:[#allocation2 + $0x68] sm:$0xff] %v372_v59 }
 0x1da   :  { %553 = shalt.err (!%p550_p4)
}
 0x1db   :  { %s554_s23 = scalar_lea.hbm %s708_s5, 2048 }
 0x1dc   :  { %p555_p5 = scmp.ne.s32.totalorder %s708_s5, %s554_s23  ;;  %p558_p6 = scmp.lt.u32.totalorder %s554_s23, %s708_s5 }
 0x1de   :  { %p560_p7 = pnand %p558_p6, %p555_p5 }
 0x1e0   :  { %563 = shalt.err (!%p560_p7)
}
 0x1e1   :  { %s567_s28 = smov 128   ;;  %s568_s29 = smov 8  }
 0x1e2   :  { %410 = dma.vmem_to_hbm [thread:$0]  %s405_s19, 2048, %s708_s5, [#allocation3], %s567_s28, %s567_s28, %s568_s29  }
 0x1e3   :  { %564 = dma.done.wait [#allocation3], 2048  }
 0x1e4   :  { %565 = vsyncadd [#allocation3], 4294965248 }
 0x1e5   :  { %414 = vsyncpa [#allocation3], 1 }

</bundles_post_ra>
